<compile_context>
chip_gen: v5e
topology: v5e:2x2
jax: 0.10.0
libtpu: 0.0.40
codegen_flags: <defaults>
</compile_context>

<pallas_src>
import functools

import jax
import jax.numpy as jnp
from jax.experimental import pallas as pl
from jax.experimental.pallas import tpu as pltpu


def mlp_kernel(x_ref, w1_ref, b1_ref, w2_ref, b2_ref, g_ref, beta_ref, o_ref):
    # ---- Linear 1: x (TB, in) · w1 (emb, in) contracted on last dims ----
    # (torch layout consumed directly; MXU handles the transposed RHS.)
    h = jax.lax.dot_general(
        x_ref[...], w1_ref[...],
        dimension_numbers=(((1,), (1,)), ((), ())),
        preferred_element_type=jnp.float32,
    ) + b1_ref[...]                                      # fp32 accumulator

    # ---- GELU (exact erf form, matching nn.GELU(approximate='none')) ----
    # TODO(synk): jax.nn.gelu(approximate=True) would move this to the EUP if
    #             exact-erf parity is ever negotiable.
    h = 0.5 * h * (1.0 + jax.lax.erf(h * 0.7071067811865476))

    # ---- Linear 2: h (TB, emb) · w2 (out, emb), back in compute dtype ----
    y = jax.lax.dot_general(
        h.astype(w2_ref.dtype), w2_ref[...],
        dimension_numbers=(((1,), (1,)), ((), ())),
        preferred_element_type=jnp.float32,
    ) + b2_ref[...]

    # ---- LayerNorm over last dim (eps=1e-5), single-pass stats in fp32 ----
    n = y.shape[-1]
    inv_n = 1.0 / n
    s = jnp.sum(y, axis=-1, keepdims=True)
    ss = jnp.sum(y * y, axis=-1, keepdims=True)
    mean = s * inv_n
    var = jnp.maximum(ss * inv_n - mean * mean, 0.0)
    y = (y - mean) * jax.lax.rsqrt(var + 1e-5)
    y = y * g_ref[...] + beta_ref[...]

    # ---- Dropout(0.25): identity in eval mode ----
    o_ref[...] = y.astype(o_ref.dtype)


def _pick_block_rows(B, in_dim, emb_dim, out_dim, itemsize,
                     vmem_budget_bytes=8 * 1024 * 1024):
    """Largest batch tile (multiple of 8, <=512) whose working set fits a
    conservative VMEM budget (safe even on v7x's 64 MiB VMEM / 32 MiB scoped
    default alongside the resident weights)."""
    per_row = (2 * (in_dim + out_dim) * itemsize      # double-buffered x/out tiles
               + emb_dim * 4 + out_dim * 4)           # fp32 intermediates
    tb = max(8, min(512, vmem_budget_bytes // max(per_row, 1)))
    tb = (tb // 8) * 8
    return B if B <= tb else tb


@functools.partial(jax.jit, static_argnames=("compute_dtype", "block_rows"))
def mlp_forward(x, w1, b1, w2, b2, gamma, beta,
                compute_dtype=None, block_rows=None):
    """x: (B, in_dim). w1: (emb, in) torch layout; w2: (out, emb) torch layout.

    compute_dtype: optional dtype (e.g. jnp.bfloat16) for the matmul operands;
    accumulation and LayerNorm math stay fp32. Output dtype == compute dtype
    (or x.dtype if compute_dtype is None).
    """
    B, in_dim = x.shape
    emb_dim, _ = w1.shape
    out_dim, _ = w2.shape

    cd = jnp.dtype(compute_dtype) if compute_dtype is not None else x.dtype
    x_c = x.astype(cd)
    w1_c = w1.astype(cd)
    w2_c = w2.astype(cd)

    # Bias / LayerNorm params as fp32 (1, dim) rows (broadcast over the tile).
    b1_r = b1.reshape(1, emb_dim).astype(jnp.float32)
    b2_r = b2.reshape(1, out_dim).astype(jnp.float32)
    g_r = gamma.reshape(1, out_dim).astype(jnp.float32)
    beta_r = beta.reshape(1, out_dim).astype(jnp.float32)

    tb = block_rows if block_rows is not None else _pick_block_rows(
        B, in_dim, emb_dim, out_dim, cd.itemsize)
    grid = (pl.cdiv(B, tb),)

    const = lambda i: (0, 0)   # weights / params: same block every grid step

    return pl.pallas_call(
        mlp_kernel,
        out_shape=jax.ShapeDtypeStruct((B, out_dim), cd),
        grid=grid,
        in_specs=[
            pl.BlockSpec((tb, in_dim), lambda i: (i, 0)),       # x tile streams
            pl.BlockSpec((emb_dim, in_dim), const),             # w1 resident
            pl.BlockSpec((1, emb_dim), const),                  # b1
            pl.BlockSpec((out_dim, emb_dim), const),            # w2 resident
            pl.BlockSpec((1, out_dim), const),                  # b2
            pl.BlockSpec((1, out_dim), const),                  # gamma
            pl.BlockSpec((1, out_dim), const),                  # beta
        ],
        out_specs=pl.BlockSpec((tb, out_dim), lambda i: (i, 0)),
        compiler_params=pltpu.CompilerParams(
            dimension_semantics=("parallel",)),
    )(x_c, w1_c, b1_r, w2_c, b2_r, g_r, beta_r)


def reference_forward(x, w1, b1, w2, b2, gamma, beta, compute_dtype=None):
    """Pure-JAX reference of the PyTorch forward (eval mode)."""
    cd = jnp.dtype(compute_dtype) if compute_dtype is not None else x.dtype
    xc = x.astype(cd)
    w1c = w1.astype(cd)
    w2c = w2.astype(cd)
    h = jnp.dot(xc, w1c.T, preferred_element_type=jnp.float32,
                precision=jax.lax.Precision.HIGHEST) + b1.astype(jnp.float32)
    h = 0.5 * h * (1.0 + jax.lax.erf(h / jnp.sqrt(2.0)))
    y = jnp.dot(h.astype(cd), w2c.T, preferred_element_type=jnp.float32,
                precision=jax.lax.Precision.HIGHEST) + b2.astype(jnp.float32)
    mean = jnp.mean(y, axis=-1, keepdims=True)
    var = jnp.mean((y - mean) ** 2, axis=-1, keepdims=True)
    y = (y - mean) / jnp.sqrt(var + 1e-5)
    y = y * gamma.astype(jnp.float32) + beta.astype(jnp.float32)
    return y.astype(cd)


if __name__ == "__main__":
    IN_DIM, EMB_DIM, OUT_DIM = 16, 32, 16

    key = jax.random.PRNGKey(0)
    kx, kw1, kb1, kw2, kb2, kx2 = jax.random.split(key, 6)

    # torch Linear stores weights as (out_features, in_features).
    w1 = jax.random.normal(kw1, (EMB_DIM, IN_DIM), dtype=jnp.float32) * 0.1
    b1 = jax.random.normal(kb1, (EMB_DIM,), dtype=jnp.float32) * 0.1
    w2 = jax.random.normal(kw2, (OUT_DIM, EMB_DIM), dtype=jnp.float32) * 0.1
    b2 = jax.random.normal(kb2, (OUT_DIM,), dtype=jnp.float32) * 0.1
    gamma = jnp.ones((OUT_DIM,), dtype=jnp.float32)   # LayerNorm default init
    beta = jnp.zeros((OUT_DIM,), dtype=jnp.float32)

    # --- Test 1: fp32 path, single-tile grid (B == TB) -----------------------
    B1 = 8
    x1 = jax.random.normal(kx, (B1, IN_DIM), dtype=jnp.float32)
    out1 = jax.block_until_ready(mlp_forward(x1, w1, b1, w2, b2, gamma, beta))
    ref1 = reference_forward(x1, w1, b1, w2, b2, gamma, beta)
    assert out1.shape == (B1, OUT_DIM)
    err1 = jnp.max(jnp.abs(out1 - ref1))
    assert jnp.allclose(out1, ref1, atol=1e-4, rtol=1e-4), f"fp32 max err {err1}"

    # --- Test 2: bf16 compute path, multi-step batch grid --------------------
    B2 = 256
    x2 = jax.random.normal(kx2, (B2, IN_DIM), dtype=jnp.float32)
    out2 = jax.block_until_ready(
        mlp_forward(x2, w1, b1, w2, b2, gamma, beta,
                    compute_dtype=jnp.bfloat16, block_rows=64))
    ref2 = reference_forward(x2, w1, b1, w2, b2, gamma, beta,
                             compute_dtype=jnp.bfloat16)
    assert out2.shape == (B2, OUT_DIM)
    err2 = jnp.max(jnp.abs(out2.astype(jnp.float32) - ref2.astype(jnp.float32)))
    assert jnp.allclose(out2.astype(jnp.float32), ref2.astype(jnp.float32),
                        atol=3e-2, rtol=3e-2), f"bf16 max err {err2}"

    print("KERNEL_OK")
</pallas_src>

<mosaic_0001>
module attributes {stable_mosaic.version = 11 : i64} {
  func.func @mlp_kernel(%arg0: i32, %arg1: memref<8x16xf32, #tpu.memory_space<vmem>>, %arg2: memref<32x16xf32, #tpu.memory_space<vmem>>, %arg3: memref<1x32xf32, #tpu.memory_space<vmem>>, %arg4: memref<16x32xf32, #tpu.memory_space<vmem>>, %arg5: memref<1x16xf32, #tpu.memory_space<vmem>>, %arg6: memref<1x16xf32, #tpu.memory_space<vmem>>, %arg7: memref<1x16xf32, #tpu.memory_space<vmem>>, %arg8: memref<8x16xf32, #tpu.memory_space<vmem>>) attributes {dimension_semantics = [#tpu.dimension_semantics<parallel>], iteration_bounds = array<i64: 1>, scalar_prefetch = 0 : i64, scratch_operands = 0 : i64, tpu.core_type = #tpu.core_type<tc>, window_params = [{transform_indices = @transform_0, window_bounds = array<i64: 8, 16>}, {pipeline_mode = #tpu.pipeline_mode<synchronous>, transform_indices = @transform_1, window_bounds = array<i64: 32, 16>}, {pipeline_mode = #tpu.pipeline_mode<synchronous>, transform_indices = @transform_2, window_bounds = array<i64: 1, 32>}, {pipeline_mode = #tpu.pipeline_mode<synchronous>, transform_indices = @transform_3, window_bounds = array<i64: 16, 32>}, {pipeline_mode = #tpu.pipeline_mode<synchronous>, transform_indices = @transform_4, window_bounds = array<i64: 1, 16>}, {pipeline_mode = #tpu.pipeline_mode<synchronous>, transform_indices = @transform_5, window_bounds = array<i64: 1, 16>}, {pipeline_mode = #tpu.pipeline_mode<synchronous>, transform_indices = @transform_6, window_bounds = array<i64: 1, 16>}, {transform_indices = @transform_7, window_bounds = array<i64: 8, 16>}]} {
    %c0 = arith.constant 0 : index
    %c0_0 = arith.constant 0 : index
    %0 = vector.load %arg1[%c0, %c0_0] : memref<8x16xf32, #tpu.memory_space<vmem>>, vector<8x16xf32>
    %c0_1 = arith.constant 0 : index
    %c0_2 = arith.constant 0 : index
    %1 = vector.load %arg2[%c0_1, %c0_2] : memref<32x16xf32, #tpu.memory_space<vmem>>, vector<32x16xf32>
    %cst = arith.constant dense<0.000000e+00> : vector<8x32xf32>
    %2 = tpu.matmul %0, %1, %cst {dimension_numbers = #tpu.dot_dimension_numbers<[1], [1], [0], [0], [0, 0, 1, 0], [], []>} : vector<8x16xf32>, vector<32x16xf32>, vector<8x32xf32> -> vector<8x32xf32>
    %c0_3 = arith.constant 0 : index
    %c0_4 = arith.constant 0 : index
    %3 = vector.load %arg3[%c0_3, %c0_4] : memref<1x32xf32, #tpu.memory_space<vmem>>, vector<1x32xf32>
    %4 = vector.broadcast %3 : vector<1x32xf32> to vector<8x32xf32>
    %5 = arith.addf %2, %4 : vector<8x32xf32>
    %cst_5 = arith.constant 5.000000e-01 : f32
    %6 = vector.broadcast %cst_5 : f32 to vector<8x32xf32>
    %7 = arith.mulf %6, %5 : vector<8x32xf32>
    %cst_6 = arith.constant 0.707106769 : f32
    %8 = vector.broadcast %cst_6 : f32 to vector<8x32xf32>
    %9 = arith.mulf %5, %8 : vector<8x32xf32>
    %10 = math.erf %9 : vector<8x32xf32>
    %cst_7 = arith.constant 1.000000e+00 : f32
    %11 = vector.broadcast %cst_7 : f32 to vector<8x32xf32>
    %12 = arith.addf %11, %10 : vector<8x32xf32>
    %13 = arith.mulf %7, %12 : vector<8x32xf32>
    %c0_8 = arith.constant 0 : index
    %c0_9 = arith.constant 0 : index
    %14 = vector.load %arg4[%c0_8, %c0_9] : memref<16x32xf32, #tpu.memory_space<vmem>>, vector<16x32xf32>
    %cst_10 = arith.constant dense<0.000000e+00> : vector<8x16xf32>
    %15 = tpu.matmul %13, %14, %cst_10 {dimension_numbers = #tpu.dot_dimension_numbers<[1], [1], [0], [0], [0, 0, 1, 0], [], []>} : vector<8x32xf32>, vector<16x32xf32>, vector<8x16xf32> -> vector<8x16xf32>
    %c0_11 = arith.constant 0 : index
    %c0_12 = arith.constant 0 : index
    %16 = vector.load %arg5[%c0_11, %c0_12] : memref<1x16xf32, #tpu.memory_space<vmem>>, vector<1x16xf32>
    %17 = vector.broadcast %16 : vector<1x16xf32> to vector<8x16xf32>
    %18 = arith.addf %15, %17 : vector<8x16xf32>
    %cst_13 = arith.constant dense<0.000000e+00> : vector<8xf32>
    %19 = vector.multi_reduction <add>, %18, %cst_13 [1] : vector<8x16xf32> to vector<8xf32>
    %20 = vector.shape_cast %19 : vector<8xf32> to vector<8x1xf32>
    %21 = arith.mulf %18, %18 : vector<8x16xf32>
    %cst_14 = arith.constant dense<0.000000e+00> : vector<8xf32>
    %22 = vector.multi_reduction <add>, %21, %cst_14 [1] : vector<8x16xf32> to vector<8xf32>
    %23 = vector.shape_cast %22 : vector<8xf32> to vector<8x1xf32>
    %cst_15 = arith.constant 6.250000e-02 : f32
    %24 = vector.broadcast %cst_15 : f32 to vector<8x1xf32>
    %25 = arith.mulf %20, %24 : vector<8x1xf32>
    %cst_16 = arith.constant 6.250000e-02 : f32
    %26 = vector.broadcast %cst_16 : f32 to vector<8x1xf32>
    %27 = arith.mulf %23, %26 : vector<8x1xf32>
    %28 = arith.mulf %25, %25 : vector<8x1xf32>
    %29 = arith.subf %27, %28 : vector<8x1xf32>
    %cst_17 = arith.constant 0.000000e+00 : f32
    %30 = vector.broadcast %cst_17 : f32 to vector<8x1xf32>
    %31 = arith.maximumf %29, %30 : vector<8x1xf32>
    %32 = vector.broadcast %25 : vector<8x1xf32> to vector<8x16xf32>
    %33 = arith.subf %18, %32 : vector<8x16xf32>
    %cst_18 = arith.constant 9.99999974E-6 : f32
    %34 = vector.broadcast %cst_18 : f32 to vector<8x1xf32>
    %35 = arith.addf %31, %34 : vector<8x1xf32>
    %36 = math.rsqrt %35 : vector<8x1xf32>
    %37 = vector.broadcast %36 : vector<8x1xf32> to vector<8x16xf32>
    %38 = arith.mulf %33, %37 : vector<8x16xf32>
    %c0_19 = arith.constant 0 : index
    %c0_20 = arith.constant 0 : index
    %39 = vector.load %arg6[%c0_19, %c0_20] : memref<1x16xf32, #tpu.memory_space<vmem>>, vector<1x16xf32>
    %40 = vector.broadcast %39 : vector<1x16xf32> to vector<8x16xf32>
    %41 = arith.mulf %38, %40 : vector<8x16xf32>
    %c0_21 = arith.constant 0 : index
    %c0_22 = arith.constant 0 : index
    %42 = vector.load %arg7[%c0_21, %c0_22] : memref<1x16xf32, #tpu.memory_space<vmem>>, vector<1x16xf32>
    %43 = vector.broadcast %42 : vector<1x16xf32> to vector<8x16xf32>
    %44 = arith.addf %41, %43 : vector<8x16xf32>
    %c0_23 = arith.constant 0 : index
    %c0_24 = arith.constant 0 : index
    %45 = vector.load %arg8[%c0_23, %c0_24] : memref<8x16xf32, #tpu.memory_space<vmem>>, vector<8x16xf32>
    tpu.vector_store %arg8[%c0_23, %c0_24], %44 {strides = array<i32>} : memref<8x16xf32, #tpu.memory_space<vmem>>, vector<8x16xf32>,
    return
  }
  func.func @transform_0(%arg0: i32) -> (i32, i32) {
    %c0_i32 = arith.constant 0 : i32
    %c0_i32_0 = arith.constant 0 : i32
    return %arg0, %c0_i32 : i32, i32
  }
  func.func @transform_1(%arg0: i32) -> (i32, i32) {
    %c0_i32 = arith.constant 0 : i32
    %c0_i32_0 = arith.constant 0 : i32
    %c0_i32_1 = arith.constant 0 : i32
    return %c0_i32, %c0_i32_0 : i32, i32
  }
  func.func @transform_2(%arg0: i32) -> (i32, i32) {
    %c0_i32 = arith.constant 0 : i32
    %c0_i32_0 = arith.constant 0 : i32
    %c0_i32_1 = arith.constant 0 : i32
    return %c0_i32, %c0_i32_0 : i32, i32
  }
  func.func @transform_3(%arg0: i32) -> (i32, i32) {
    %c0_i32 = arith.constant 0 : i32
    %c0_i32_0 = arith.constant 0 : i32
    %c0_i32_1 = arith.constant 0 : i32
    return %c0_i32, %c0_i32_0 : i32, i32
  }
  func.func @transform_4(%arg0: i32) -> (i32, i32) {
    %c0_i32 = arith.constant 0 : i32
    %c0_i32_0 = arith.constant 0 : i32
    %c0_i32_1 = arith.constant 0 : i32
    return %c0_i32, %c0_i32_0 : i32, i32
  }
  func.func @transform_5(%arg0: i32) -> (i32, i32) {
    %c0_i32 = arith.constant 0 : i32
    %c0_i32_0 = arith.constant 0 : i32
    %c0_i32_1 = arith.constant 0 : i32
    return %c0_i32, %c0_i32_0 : i32, i32
  }
  func.func @transform_6(%arg0: i32) -> (i32, i32) {
    %c0_i32 = arith.constant 0 : i32
    %c0_i32_0 = arith.constant 0 : i32
    %c0_i32_1 = arith.constant 0 : i32
    return %c0_i32, %c0_i32_0 : i32, i32
  }
  func.func @transform_7(%arg0: i32) -> (i32, i32) {
    %c0_i32 = arith.constant 0 : i32
    %c0_i32_0 = arith.constant 0 : i32
    return %arg0, %c0_i32 : i32, i32
  }
}

</mosaic_0001>

<bundles_post_ra>
// kernel: mlp_forward.1
= control target key start
LH: loop header
LB: loop body
LE: loop exit
PB: predicated region body
PF: predicated region fallthrough
CT: control target
= control target key end

     0   :  { %vm36_vm0 = vcmask 130048   ;;  %s336_s0 = inlined_call_operand.vmem [shape: f32[8,16], index: 0, kind: input, shape index: {}]   ;;  %s337_s1 = inlined_call_operand.vmem [shape: f32[32,16], index: 1, kind: input, shape index: {}]   ;;  %s338_s2 = inlined_call_operand.vmem [shape: f32[1,32], index: 2, kind: input, shape index: {}]   ;;  %s339_s3 = inlined_call_operand.vmem [shape: f32[16,32], index: 3, kind: input, shape index: {}]   ;;  %s340_s4 = inlined_call_operand.vmem [shape: f32[1,16], index: 4, kind: input, shape index: {}]   ;;  %s341_s5 = inlined_call_operand.vmem [shape: f32[1,16], index: 5, kind: input, shape index: {}]   ;;  %s342_s6 = inlined_call_operand.vmem [shape: f32[1,16], index: 6, kind: input, shape index: {}]   ;;  %s343_s7 = inlined_call_operand.hbm [shape: f32[8,16], index: 7, kind: output, shape index: {}]  }
   0x1   :  { %v31_v0 = vld [vmem:[%s337_s1 + $0x18] sm:$0xff]  ;;  %v30_v1 = vld [vmem:[%s337_s1 + $0x10] sm:$0xff] }
   0x2   :  { %204 = vmatpush.xpose.msk.msra.mxu0 %vm36_vm0, %v31_v0 }
   0x3   :  { %12 = vsyncpa [#allocation3], 0  ;;  %v29_v2 = vld [vmem:[%s337_s1 + $0x8] sm:$0xff]  ;;  %v28_v3 = vld [vmem:[%s337_s1] sm:$0xff]  ;;  %vm122_vm1 = vcmask 261120   ;;  %s248_s18 = smov [#allocation2]  }
   0x4   :  { %v27_v4 = vld [vmem:[%s336_s0] sm:$0xff]  ;;  %v117_v17 = vld [vmem:[%s339_s3 + $0x8] sm:$0xff]  ;;  %s193_s19 = sshll.u32 %s248_s18, 4  ;;  %s195_s22 = sshll.u32 %s343_s7, 4  ;;  %s194_s19 = int_to_ptr.vmem [resolvable:$true] %s193_s19  ;;  %s196_s22 = int_to_ptr.hbm [resolvable:$true] %s195_s22 }
   0x5   :  { %v214_v5 = vld [vmem:[%s338_s2] ss:$0 sm:$0xff]  ;;  %210 = vmatpush.xpose.msk.msra.mxu1 %vm122_vm1, %v117_v17 }
   0x6   :  { %205 = vmatpush.xpose.msk.msra.mxu0 %vm36_vm0, %v30_v1  ;;  %v116_v20 = vld [vmem:[%s339_s3] sm:$0xff] }
   0x7   :  { %v215_v49 = vld [vmem:[%s340_s4] ss:$0 sm:$0xff] }
   0x9   :  { %211 = vmatpush.xpose.msk.msra.mxu1 %vm122_vm1, %v116_v20 }
   0xa   :  { %206 = vmatpush.xpose.msk.msra.mxu0 %vm36_vm0, %v29_v2 }
   0xe   :  { %207 = vmatpush.xpose.msk.msra.mxu0 %vm36_vm0, %v28_v3 }
  0x11   :  { %208 = vmatmul.msk.f32.vlgmr.msra.gmra.mxu0 %vm36_vm0, %v27_v4 }
  0x8e   :  { %v69_v6 = vpop.f32.mrf.mxu0 }
  0x8f   :  { %v70_v7 = vadd.f32 %v214_v5, %v69_v6  ;;  %v216_v6 = vld [vmem:[%s341_s5] ss:$0 sm:$0xff] }
  0x91   :  { %v73_v8 = vmul.f32 0.70710677, %v70_v7  ;;  %v72_v46 = vmul.f32 0.5, %v70_v7 }
  0x93   :  { %v74_v9 = vmul.f32 %v73_v8, %v73_v8 }
  0x95   :  { %v75_v10 = vmin.f32 %v74_v9, 16.0  ;;  %v217_v9 = vld [vmem:[%s342_s6] ss:$0 sm:$0xff] }
  0x97   :  { %v76_v11 = vmul.f32 2.1237322e-06, %v75_v10  ;;  %v87_v12 = vmul.f32 3.8918573e-05, %v75_v10 }
  0x99   :  { %v77_v13 = vadd.f32 0.00028619796, %v76_v11  ;;  %v88_v14 = vadd.f32 0.001143296, %v87_v12 }
  0x9b   :  { %v78_v15 = vmul.f32 %v77_v13, %v75_v10  ;;  %v89_v16 = vmul.f32 %v88_v14, %v75_v10 }
  0x9d   :  { %v90_v18 = vadd.f32 0.014752088, %v89_v16  ;;  %v79_v19 = vadd.f32 0.0036580483, %v78_v15 }
  0x9f   :  { %v91_v21 = vmul.f32 %v90_v18, %v75_v10  ;;  %v80_v23 = vmul.f32 %v79_v19, %v75_v10 }
  0xa1   :  { %v92_v22 = vadd.f32 0.112945676, %v91_v21  ;;  %v81_v26 = vadd.f32 0.05243302, %v80_v23 }
  0xa3   :  { %v93_v24 = vmul.f32 %v92_v22, %v75_v10  ;;  %v82_v29 = vmul.f32 %v81_v26, %v75_v10 }
  0xa5   :  { %v94_v25 = vadd.f32 0.4994258, %v93_v24  ;;  %v83_v30 = vadd.f32 0.18741608, %v82_v29 }
  0xa7   :  { %v95_v27 = vmul.f32 %v94_v25, %v75_v10  ;;  %v84_v32 = vmul.f32 %v83_v30, %v75_v10 }
  0xa9   :  { %v96_v28 = vadd.f32 1.0, %v95_v27  ;;  %v85_v36 = vadd.f32 1.1283791, %v84_v32 }
  0xab   :  { %218 = vrcp.f32 %v96_v28  ;;  %v108_v35 = vand.u32 2147483648, %v96_v28  ;;  %v106_v38 = vand.u32 2147483647, %v96_v28  ;;  %vm102_vm3 = vweird.f32 %v96_v28 }
  0xac   :  { %v86_v41 = vmul.f32 %v85_v36, %v73_v8 }
  0xad   :  { %v109_v40 = vor.u32 1.1754944e-38, %v108_v35  ;;  %vm107_vm5 = vcmp.eq.f32.partialorder %v106_v38, 8.507059e+37 }
  0xb1   :  { %v219_v31 = vpop.eup %218 }
  0xb2   :  { %v98_v33 = vmul.f32 %v219_v31, %v96_v28  ;;  %vm103_vm2 = vweird.f32 %v219_v31 }
  0xb3   :  { %vm104_vm4 = vmor %vm102_vm3, %vm103_vm2 }
  0xb4   :  { %v99_v34 = vsub.f32 1.0, %v98_v33 }
  0xb6   :  { %v100_v37 = vmul.f32 %v219_v31, %v99_v34 }
  0xb8   :  { %v101_v39 = vadd.f32 %v219_v31, %v100_v37 }
  0xba   :  { %v105_v42 = vsel %vm104_vm4, %v219_v31, %v101_v39 }
  0xbb   :  { %v110_v43 = vsel %vm107_vm5, %v109_v40, %v105_v42 }
  0xbc   :  { %v111_v44 = vmul.f32 %v110_v43, %v86_v41 }
  0xbe   :  { %v209_v45 = vclamps-f32 %v111_v44, 1.0 }
  0xc0   :  { %v114_v47 = vadd.f32 1.0, %v209_v45 }
  0xc2   :  { %v115_v48 = vmul.f32 %v114_v47, %v72_v46 }
  0xc4   :  { %212 = vmatmul.msk.f32.vlgmr.msra.gmra.mxu1 %vm122_vm1, %v115_v48 }
 0x141   :  { %v149_v50 = vpop.f32.mrf.mxu1 }
 0x142   :  { %v150_v51 = vadd.f32 %v215_v49, %v149_v50 }
 0x144   :  { %v152_v52 = vsel %vm36_vm0, %v150_v51, 0.0  ;;  %v155_v53 = vmul.f32 %v150_v51, %v150_v51 }
 0x145   :  { %153 = vadd.xlane.f32.xlu0 %v152_v52 }
 0x146   :  { %v156_v54 = vsel %vm36_vm0, %v155_v53, 0.0 }
 0x14d   :  { %157 = vadd.xlane.f32.xlu0 %v156_v54 }
 0x1b8   :  { %v154_v55 = vpop.xlane.xlu0 %153 }
 0x1b9   :  { %v159_v56 = vmul.f32 0.0625, %v154_v55 }
 0x1bb   :  { %v161_v58 = vmul.f32 %v159_v56, %v159_v56  ;;  %v164_v5 = vsub.f32 %v150_v51, %v159_v56 }
 0x1c0   :  { %v158_v57 = vpop.xlane.xlu0 %157 }
 0x1c1   :  { %v160_v59 = vmul.f32 0.0625, %v158_v57 }
 0x1c3   :  { %v162_v60 = vsub.f32 %v160_v59, %v161_v58 }
 0x1c5   :  { %v163_v61 = vmax.f32 %v162_v60, 0.0 }
 0x1c7   :  { %v165_v62 = vadd.f32 1e-05, %v163_v61 }
 0x1c9   :  { %220 = vrsqrt.f32 %v165_v62  ;;  %vm172_vm7 = vweird.f32 %v165_v62 }
 0x1cf   :  { %v221_v63 = vpop.eup %220 }
 0x1d0   :  { %v167_v0 = vmul.f32 %v221_v63, %v165_v62  ;;  %vm173_vm6 = vweird.f32 %v221_v63 }
 0x1d1   :  { %vm174_vm8 = vmor %vm172_vm7, %vm173_vm6 }
 0x1d2   :  { %v168_v1 = vmul.f32 %v221_v63, %v167_v0 }
 0x1d4   :  { %v169_v2 = vmul.f32 0.5, %v168_v1 }
 0x1d6   :  { %v170_v3 = vsub.f32 1.5, %v169_v2 }
 0x1d8   :  { %v171_v4 = vmul.f32 %v221_v63, %v170_v3 }
 0x1da   :  { %v175_v7 = vsel %vm174_vm8, %v221_v63, %v171_v4 }
 0x1db   :  { %v176_v8 = vmul.f32 %v175_v7, %v164_v5 }
 0x1dd   :  { %v181_v10 = vmul.f32 %v216_v6, %v176_v8 }
 0x1df   :  { %v186_v11 = vadd.f32 %v217_v9, %v181_v10 }
 0x1e1   :  { %187 = vst.msk [vmem:[#allocation2] sm:$0xff] %vm36_vm0, %v186_v11 }
 0x1e2   :  { %198 = dma.vmem_to_hbm [thread:$0]  %s194_s19, 128, %s196_s22, [#allocation3]  }
 0x1e3   :  { %246 = dma.done.wait [#allocation3], 128  }
 0x1e4   :  { %247 = vsyncadd [#allocation3], 4294967168 }
 0x1e5   :  { %203 = vsyncpa [#allocation3], 1 }

</bundles_post_ra>
